<compile_context>
chip_gen: v6e
topology: v6e:2x2x1
jax: 0.10.0
libtpu: 0.0.40
codegen_flags: <defaults>
</compile_context>

<pallas_src>
import jax
import jax.numpy as jnp
from jax.experimental import pallas as pl
from jax.experimental.pallas import tpu as pltpu  # noqa: F401  (TPU backend assumed)

# ----------------------------- small config ---------------------------------
B = 2              # batch size
Q = 8              # number of queries per image
C = 16             # num_classes (no-object handled implicitly by the focal loss)
NT = 3             # ground-truth boxes per image (synthetic targets)
A = 2              # number of aux decoder layers evaluated
S = 1 + A          # prediction sets: final + aux
FOCAL_ALPHA = 0.25 # focal_alpha (gamma = 2 is hard-coded in the reference call)


# --------------------- fused SetCriterion loss kernel -----------------------
def set_criterion_kernel(logits_ref,    # (S*B*Q, C) stacked pred_logits (final + aux), flattened
                         onehot_ref,    # (S*B*Q, C) target one-hot (num_classes column dropped)
                         mlogits_ref,   # (S*NM, C)  logits at matched (batch, query) positions
                         mlabel_oh_ref, # (S*NM, C)  one-hot of matched target labels
                         sboxes_ref,    # (S*NM, 4)  matched predicted boxes, cxcywh
                         tboxes_ref,    # (S*NM, 4)  matched target boxes, cxcywh
                         tlen_ref,      # (S*B, 1)   #targets per image (tiled over sets)
                         sel_ce_ref,    # (S, S*B*Q) per-set sum selector, pre-scaled by 1/num_boxes
                         sel_cnt_ref,   # (S*B, S*B*Q) per-(set,batch) query-count selector
                         sel_cmean_ref, # (S, S*B)   per-set batch-mean selector (1/B baked in)
                         sel_box_ref,   # (S, S*NM)  per-set matched-sum selector (1/num_boxes baked in)
                         sel_acc_ref,   # (S, S*NM)  per-set matched-mean selector (1/NM baked in)
                         eye8_ref,      # (8, 8)     identity, used to place columns in the output slab
                         out_ref):      # (S, 8)  [ce, class_err, card_err, bbox, giou, xy, hw, 0]
    f32 = jnp.float32
    x = logits_ref[...]
    t = onehot_ref[...]

    # ---- loss_labels: sigmoid focal loss (alpha=0.25, gamma=2) ----
    p = 1.0 / (1.0 + jnp.exp(-x))
    ce = jnp.maximum(x, 0.0) - x * t + jnp.log(1.0 + jnp.exp(-jnp.abs(x)))   # stable BCE-with-logits
    one_minus_pt = 1.0 - (p * t + (1.0 - p) * (1.0 - t))
    alpha_t = FOCAL_ALPHA * t + (1.0 - FOCAL_ALPHA) * (1.0 - t)
    focal = alpha_t * ce * one_minus_pt * one_minus_pt                        # gamma = 2
    focal_row = jnp.sum(focal, axis=-1, keepdims=True)                        # (S*B*Q, 1)
    # reference: focal.mean(1).sum()/num_boxes * Q  ==  focal.sum()/num_boxes  (exact)
    loss_ce = jnp.dot(sel_ce_ref[...], focal_row, preferred_element_type=f32)          # (S,1)

    # ---- class_error (logging): matched query is correct iff its logit at the target
    #      label attains the row max (== argmax up to measure-zero ties). ----
    ml = mlogits_ref[...]
    val_at_label = jnp.sum(ml * mlabel_oh_ref[...], axis=-1, keepdims=True)
    correct = (val_at_label >= jnp.max(ml, axis=-1, keepdims=True)).astype(f32)
    class_error = 100.0 - 100.0 * jnp.dot(sel_acc_ref[...], correct,
                                          preferred_element_type=f32)                   # (S,1)

    # ---- loss_cardinality (logging): argmax != C-1  <=>  max over classes [0..C-2] >= logit[C-1]
    m_rest = jnp.max(x[:, 0:C - 1], axis=-1, keepdims=True)
    not_empty = (m_rest >= x[:, C - 1:C]).astype(f32)                                   # (S*B*Q,1)
    counts = jnp.dot(sel_cnt_ref[...], not_empty, preferred_element_type=f32)           # (S*B,1)
    card_err = jnp.dot(sel_cmean_ref[...], jnp.abs(counts - tlen_ref[...]),
                       preferred_element_type=f32)                                      # (S,1)

    # ---- loss_boxes: L1 (+ xy/hw splits) and element-wise GIoU (== diag of generalized_box_iou)
    sb = sboxes_ref[...]
    tb = tboxes_ref[...]
    l1 = jnp.abs(sb - tb)
    sel_box = sel_box_ref[...]
    loss_bbox = jnp.dot(sel_box, jnp.sum(l1, axis=-1, keepdims=True),
                        preferred_element_type=f32)
    loss_xy = jnp.dot(sel_box, jnp.sum(l1[:, 0:2], axis=-1, keepdims=True),
                      preferred_element_type=f32)
    loss_hw = jnp.dot(sel_box, jnp.sum(l1[:, 2:4], axis=-1, keepdims=True),
                      preferred_element_type=f32)

    def xyxy(b):
        cx, cy, w, h = b[:, 0:1], b[:, 1:2], b[:, 2:3], b[:, 3:4]
        return cx - 0.5 * w, cy - 0.5 * h, cx + 0.5 * w, cy + 0.5 * h

    sx1, sy1, sx2, sy2 = xyxy(sb)
    tx1, ty1, tx2, ty2 = xyxy(tb)
    area_s = (sx2 - sx1) * (sy2 - sy1)
    area_t = (tx2 - tx1) * (ty2 - ty1)
    iw = jnp.maximum(jnp.minimum(sx2, tx2) - jnp.maximum(sx1, tx1), 0.0)
    ih = jnp.maximum(jnp.minimum(sy2, ty2) - jnp.maximum(sy1, ty1), 0.0)
    inter = iw * ih
    union = area_s + area_t - inter
    iou = inter / union
    ew = jnp.maximum(jnp.maximum(sx2, tx2) - jnp.minimum(sx1, tx1), 0.0)
    eh = jnp.maximum(jnp.maximum(sy2, ty2) - jnp.minimum(sy1, ty1), 0.0)
    area_e = ew * eh
    giou = iou - (area_e - union) / area_e                                               # (S*NM,1)
    loss_giou = jnp.dot(sel_box, 1.0 - giou, preferred_element_type=f32)                 # (S,1)

    # ---- single consolidated (S, 8) store ----
    e = eye8_ref[...]
    out_ref[...] = (loss_ce * e[0:1, :] + class_error * e[1:2, :] + card_err * e[2:3, :]
                    + loss_bbox * e[3:4, :] + loss_giou * e[4:5, :]
                    + loss_xy * e[5:6, :] + loss_hw * e[6:7, :])


# ------------------------------ matcher stub ---------------------------------
def hungarian_matcher_stub(outputs, targets):
    # TODO(synk): HungarianMatcher is an external submodule (models/dino/matcher.py, uses
    # scipy.optimize.linear_sum_assignment); stubbed with fixed deterministic assignments.
    indices = []
    for _b, tgt in enumerate(targets):
        nt = int(tgt["labels"].shape[0])
        src = jnp.array([1, 4, 6], dtype=jnp.int32)[:nt]
        perm = jnp.array([2, 0, 1], dtype=jnp.int32)[:nt]
        indices.append((src, perm))
    return indices


# ---------------------------- SetCriterion.forward ---------------------------
def set_criterion_forward(outputs, targets):
    pred_logits = outputs["pred_logits"]                 # (B, Q, C)
    pred_boxes = outputs["pred_boxes"]                   # (B, Q, 4)
    aux = outputs.get("aux_outputs", [])
    logits_sets = [pred_logits] + [a["pred_logits"] for a in aux]
    boxes_sets = [pred_boxes] + [a["pred_boxes"] for a in aux]
    n_sets = len(logits_sets)

    # matcher (external module).  The reference re-runs it per aux set; with the
    # deterministic stub the assignment is identical for every set.
    indices = hungarian_matcher_stub(outputs, targets)

    # num_boxes: sum of target lengths, world size 1, clamp(min=1), .item() -> host scalar.
    nb = float(max(sum(int(t["labels"].shape[0]) for t in targets), 1))

    # ---------- gather / flatten (tiny, host-side JAX) ----------
    batch_idx = jnp.concatenate([jnp.full_like(src, b) for b, (src, _) in enumerate(indices)])
    src_idx = jnp.concatenate([src for src, _ in indices])
    nm = int(batch_idx.shape[0])                         # matched pairs per set

    logits_stack = jnp.stack(logits_sets, axis=0)        # (S, B, Q, C)
    boxes_stack = jnp.stack(boxes_sets, axis=0)          # (S, B, Q, 4)

    tgt_labels_perm = jnp.concatenate(
        [t["labels"][perm] for t, (_, perm) in zip(targets, indices)])           # (NM,)
    target_classes = jnp.full((B, Q), C, dtype=jnp.int32)
    target_classes = target_classes.at[batch_idx, src_idx].set(tgt_labels_perm)
    onehot = jax.nn.one_hot(target_classes, C + 1, dtype=jnp.float32)[..., :C]   # (B, Q, C)

    logits_flat = logits_stack.reshape(n_sets * B * Q, C)
    onehot_flat = jnp.broadcast_to(onehot[None], (n_sets, B, Q, C)).reshape(n_sets * B * Q, C)

    matched_logits = logits_stack[:, batch_idx, src_idx, :].reshape(n_sets * nm, C)
    mlabel_oh = jnp.tile(jax.nn.one_hot(tgt_labels_perm, C, dtype=jnp.float32), (n_sets, 1))
    src_boxes = boxes_stack[:, batch_idx, src_idx, :].reshape(n_sets * nm, 4)
    tgt_boxes_one = jnp.concatenate(
        [t["boxes"][perm] for t, (_, perm) in zip(targets, indices)], axis=0)     # (NM, 4)
    tgt_boxes = jnp.tile(tgt_boxes_one, (n_sets, 1))
    tlen = jnp.array([[float(t["labels"].shape[0])] for t in targets], jnp.float32)   # (B,1)
    tlen_tiled = jnp.tile(tlen, (n_sets, 1))                                           # (S*B,1)

    # ---------- per-set reduction selectors (normalisations baked in) ----------
    eyeS = jnp.eye(n_sets, dtype=jnp.float32)
    sel_ce = jnp.kron(eyeS, jnp.ones((1, B * Q), jnp.float32)) / nb                    # (S, S*B*Q)
    sel_cnt = jnp.kron(jnp.eye(n_sets * B, dtype=jnp.float32),
                       jnp.ones((1, Q), jnp.float32))                                  # (S*B, S*B*Q)
    sel_cmean = jnp.kron(eyeS, jnp.ones((1, B), jnp.float32)) / float(B)               # (S, S*B)
    sel_box = jnp.kron(eyeS, jnp.ones((1, nm), jnp.float32)) / nb                      # (S, S*NM)
    sel_acc = jnp.kron(eyeS, jnp.ones((1, nm), jnp.float32)) / float(nm)               # (S, S*NM)
    eye8 = jnp.eye(8, dtype=jnp.float32)

    # ---------- single grid-less Pallas call (whole arrays live in VMEM) ----------
    losses_mat = pl.pallas_call(
        set_criterion_kernel,
        out_shape=jax.ShapeDtypeStruct((n_sets, 8), jnp.float32),
    )(logits_flat, onehot_flat, matched_logits, mlabel_oh,
      src_boxes, tgt_boxes, tlen_tiled,
      sel_ce, sel_cnt, sel_cmean, sel_box, sel_acc, eye8)

    # ---------- assemble the loss dict exactly as SetCriterion.forward does ----------
    def set_losses(s, suffix=""):
        d = {
            "loss_ce" + suffix: losses_mat[s, 0],
            "cardinality_error" + suffix: losses_mat[s, 2],
            "loss_bbox" + suffix: losses_mat[s, 3],
            "loss_giou" + suffix: losses_mat[s, 4],
            "loss_xy" + suffix: losses_mat[s, 5],
            "loss_hw" + suffix: losses_mat[s, 6],
        }
        if suffix == "":
            d["class_error"] = losses_mat[s, 1]          # log=True only on the top-level labels loss
        return d

    zero = jnp.zeros((), jnp.float32)
    dn_zero = {"loss_bbox_dn": zero, "loss_giou_dn": zero, "loss_ce_dn": zero,
               "loss_xy_dn": zero, "loss_hw_dn": zero, "cardinality_error_dn": zero}

    losses = {}
    losses.update(dn_zero)                               # no dn_meta -> zero placeholders
    losses.update(set_losses(0))                         # final decoder layer
    for idx in range(n_sets - 1):                        # aux decoder layers
        losses.update(set_losses(idx + 1, suffix=f"_{idx}"))
        losses.update({k + f"_{idx}": v for k, v in dn_zero.items()})
    # TODO(synk): interm_outputs / enc_outputs / da_output branches need inputs not present here.
    return losses


# ----------------------------------- main ------------------------------------
if __name__ == "__main__":
    key = jax.random.PRNGKey(0)
    k1, k2, k3, k4, k5, k6, k7 = jax.random.split(key, 7)

    def rand_logits(k):
        return jax.random.normal(k, (B, Q, C), jnp.float32)

    def rand_boxes(k, n_rows):
        kc, ks = jax.random.split(k)
        cxcy = jax.random.uniform(kc, n_rows + (2,), jnp.float32, 0.2, 0.8)
        wh = jax.random.uniform(ks, n_rows + (2,), jnp.float32, 0.05, 0.3)
        return jnp.concatenate([cxcy, wh], axis=-1)

    # synthetic model outputs (produced by the external DINO model, not by SetCriterion)
    outputs = {
        "pred_logits": rand_logits(k1),
        "pred_boxes": rand_boxes(k2, (B, Q)),
        "aux_outputs": [
            {"pred_logits": rand_logits(k3), "pred_boxes": rand_boxes(k4, (B, Q))},
            {"pred_logits": rand_logits(k5), "pred_boxes": rand_boxes(k6, (B, Q))},
        ],
        "dn_meta": None,
    }

    # synthetic targets (list of dicts, len == batch size)
    tkeys = jax.random.split(k7, 2 * B)
    targets = []
    for b in range(B):
        labels = jax.random.randint(tkeys[2 * b], (NT,), 0, C)
        boxes = rand_boxes(tkeys[2 * b + 1], (NT,))
        targets.append({"labels": labels, "boxes": boxes})

    losses = set_criterion_forward(outputs, targets)
    jax.block_until_ready(losses)

    expected = {"loss_ce", "class_error", "cardinality_error", "loss_bbox", "loss_giou",
                "loss_xy", "loss_hw", "loss_ce_0", "loss_bbox_1", "loss_giou_1",
                "loss_ce_dn", "loss_bbox_dn_0"}
    assert expected.issubset(losses.keys()), sorted(losses.keys())
    for name, val in losses.items():
        assert bool(jnp.all(jnp.isfinite(val))), name
    print("KERNEL_OK")
</pallas_src>

<mosaic_0001>
module attributes {stable_mosaic.version = 11 : i64} {
  func.func @set_criterion_kernel(%arg0: memref<48x16xf32, #tpu.memory_space<vmem>>, %arg1: memref<48x16xf32, #tpu.memory_space<vmem>>, %arg2: memref<18x16xf32, #tpu.memory_space<vmem>>, %arg3: memref<18x16xf32, #tpu.memory_space<vmem>>, %arg4: memref<18x4xf32, #tpu.memory_space<vmem>>, %arg5: memref<18x4xf32, #tpu.memory_space<vmem>>, %arg6: memref<6x1xf32, #tpu.memory_space<vmem>>, %arg7: memref<3x48xf32, #tpu.memory_space<vmem>>, %arg8: memref<6x48xf32, #tpu.memory_space<vmem>>, %arg9: memref<3x6xf32, #tpu.memory_space<vmem>>, %arg10: memref<3x18xf32, #tpu.memory_space<vmem>>, %arg11: memref<3x18xf32, #tpu.memory_space<vmem>>, %arg12: memref<8x8xf32, #tpu.memory_space<vmem>>, %arg13: memref<3x8xf32, #tpu.memory_space<vmem>>) attributes {dimension_semantics = [], scalar_prefetch = 0 : i64, scratch_operands = 0 : i64, tpu.core_type = #tpu.core_type<tc>} {
    %c0 = arith.constant 0 : index
    %c0_0 = arith.constant 0 : index
    %0 = vector.load %arg0[%c0, %c0_0] : memref<48x16xf32, #tpu.memory_space<vmem>>, vector<48x16xf32>
    %c0_1 = arith.constant 0 : index
    %c0_2 = arith.constant 0 : index
    %1 = vector.load %arg1[%c0_1, %c0_2] : memref<48x16xf32, #tpu.memory_space<vmem>>, vector<48x16xf32>
    %cst = arith.constant 0.000000e+00 : f32
    %2 = vector.broadcast %cst : f32 to vector<48x16xf32>
    %3 = arith.subf %2, %0 : vector<48x16xf32>
    %4 = math.exp %3 : vector<48x16xf32>
    %cst_3 = arith.constant 1.000000e+00 : f32
    %5 = vector.broadcast %cst_3 : f32 to vector<48x16xf32>
    %6 = arith.addf %5, %4 : vector<48x16xf32>
    %cst_4 = arith.constant 1.000000e+00 : f32
    %7 = vector.broadcast %cst_4 : f32 to vector<48x16xf32>
    %8 = arith.divf %7, %6 : vector<48x16xf32>
    %cst_5 = arith.constant 0.000000e+00 : f32
    %9 = vector.broadcast %cst_5 : f32 to vector<48x16xf32>
    %10 = arith.maximumf %0, %9 : vector<48x16xf32>
    %11 = arith.mulf %0, %1 : vector<48x16xf32>
    %12 = arith.subf %10, %11 : vector<48x16xf32>
    %13 = math.absf %0 : vector<48x16xf32>
    %cst_6 = arith.constant 0.000000e+00 : f32
    %14 = vector.broadcast %cst_6 : f32 to vector<48x16xf32>
    %15 = arith.subf %14, %13 : vector<48x16xf32>
    %16 = math.exp %15 : vector<48x16xf32>
    %cst_7 = arith.constant 1.000000e+00 : f32
    %17 = vector.broadcast %cst_7 : f32 to vector<48x16xf32>
    %18 = arith.addf %17, %16 : vector<48x16xf32>
    %19 = math.log %18 : vector<48x16xf32>
    %20 = arith.addf %12, %19 : vector<48x16xf32>
    %21 = arith.mulf %8, %1 : vector<48x16xf32>
    %cst_8 = arith.constant 1.000000e+00 : f32
    %22 = vector.broadcast %cst_8 : f32 to vector<48x16xf32>
    %23 = arith.subf %22, %8 : vector<48x16xf32>
    %cst_9 = arith.constant 1.000000e+00 : f32
    %24 = vector.broadcast %cst_9 : f32 to vector<48x16xf32>
    %25 = arith.subf %24, %1 : vector<48x16xf32>
    %26 = arith.mulf %23, %25 : vector<48x16xf32>
    %27 = arith.addf %21, %26 : vector<48x16xf32>
    %cst_10 = arith.constant 1.000000e+00 : f32
    %28 = vector.broadcast %cst_10 : f32 to vector<48x16xf32>
    %29 = arith.subf %28, %27 : vector<48x16xf32>
    %cst_11 = arith.constant 2.500000e-01 : f32
    %30 = vector.broadcast %cst_11 : f32 to vector<48x16xf32>
    %31 = arith.mulf %30, %1 : vector<48x16xf32>
    %cst_12 = arith.constant 1.000000e+00 : f32
    %32 = vector.broadcast %cst_12 : f32 to vector<48x16xf32>
    %33 = arith.subf %32, %1 : vector<48x16xf32>
    %cst_13 = arith.constant 7.500000e-01 : f32
    %34 = vector.broadcast %cst_13 : f32 to vector<48x16xf32>
    %35 = arith.mulf %34, %33 : vector<48x16xf32>
    %36 = arith.addf %31, %35 : vector<48x16xf32>
    %37 = arith.mulf %36, %20 : vector<48x16xf32>
    %38 = arith.mulf %37, %29 : vector<48x16xf32>
    %39 = arith.mulf %38, %29 : vector<48x16xf32>
    %cst_14 = arith.constant dense<0.000000e+00> : vector<48xf32>
    %40 = vector.multi_reduction <add>, %39, %cst_14 [1] : vector<48x16xf32> to vector<48xf32>
    %41 = vector.shape_cast %40 : vector<48xf32> to vector<48x1xf32>
    %c0_15 = arith.constant 0 : index
    %c0_16 = arith.constant 0 : index
    %42 = vector.load %arg7[%c0_15, %c0_16] : memref<3x48xf32, #tpu.memory_space<vmem>>, vector<3x48xf32>
    %cst_17 = arith.constant dense<0.000000e+00> : vector<3x1xf32>
    %43 = tpu.matmul %42, %41, %cst_17 {dimension_numbers = #tpu.dot_dimension_numbers<[1], [0], [0], [1], [0, 0, 1, 1], [], []>} : vector<3x48xf32>, vector<48x1xf32>, vector<3x1xf32> -> vector<3x1xf32>
    %c0_18 = arith.constant 0 : index
    %c0_19 = arith.constant 0 : index
    %44 = vector.load %arg2[%c0_18, %c0_19] : memref<18x16xf32, #tpu.memory_space<vmem>>, vector<18x16xf32>
    %c0_20 = arith.constant 0 : index
    %c0_21 = arith.constant 0 : index
    %45 = vector.load %arg3[%c0_20, %c0_21] : memref<18x16xf32, #tpu.memory_space<vmem>>, vector<18x16xf32>
    %46 = arith.mulf %44, %45 : vector<18x16xf32>
    %cst_22 = arith.constant dense<0.000000e+00> : vector<18xf32>
    %47 = vector.multi_reduction <add>, %46, %cst_22 [1] : vector<18x16xf32> to vector<18xf32>
    %48 = vector.shape_cast %47 : vector<18xf32> to vector<18x1xf32>
    %cst_23 = arith.constant dense<0xFF800000> : vector<18xf32>
    %49 = vector.multi_reduction <maximumf>, %44, %cst_23 [1] : vector<18x16xf32> to vector<18xf32>
    %50 = vector.shape_cast %49 : vector<18xf32> to vector<18x1xf32>
    %51 = arith.cmpf oge, %48, %50 : vector<18x1xf32>
    %52 = arith.extui %51 : vector<18x1xi1> to vector<18x1xi32>
    %53 = arith.sitofp %52 : vector<18x1xi32> to vector<18x1xf32>
    %c0_24 = arith.constant 0 : index
    %c0_25 = arith.constant 0 : index
    %54 = vector.load %arg11[%c0_24, %c0_25] : memref<3x18xf32, #tpu.memory_space<vmem>>, vector<3x18xf32>
    %cst_26 = arith.constant dense<0.000000e+00> : vector<3x1xf32>
    %55 = tpu.matmul %54, %53, %cst_26 {dimension_numbers = #tpu.dot_dimension_numbers<[1], [0], [0], [1], [0, 0, 1, 1], [], []>} : vector<3x18xf32>, vector<18x1xf32>, vector<3x1xf32> -> vector<3x1xf32>
    %cst_27 = arith.constant 1.000000e+02 : f32
    %56 = vector.broadcast %cst_27 : f32 to vector<3x1xf32>
    %57 = arith.mulf %56, %55 : vector<3x1xf32>
    %cst_28 = arith.constant 1.000000e+02 : f32
    %58 = vector.broadcast %cst_28 : f32 to vector<3x1xf32>
    %59 = arith.subf %58, %57 : vector<3x1xf32>
    %60 = vector.extract_strided_slice %0 {offsets = [0, 0], sizes = [48, 15], strides = [1, 1]} : vector<48x16xf32> to vector<48x15xf32>
    %cst_29 = arith.constant dense<0xFF800000> : vector<48xf32>
    %61 = vector.multi_reduction <maximumf>, %60, %cst_29 [1] : vector<48x15xf32> to vector<48xf32>
    %62 = vector.shape_cast %61 : vector<48xf32> to vector<48x1xf32>
    %63 = vector.extract_strided_slice %0 {offsets = [0, 15], sizes = [48, 1], strides = [1, 1]} : vector<48x16xf32> to vector<48x1xf32>
    %64 = arith.cmpf oge, %62, %63 : vector<48x1xf32>
    %65 = arith.extui %64 : vector<48x1xi1> to vector<48x1xi32>
    %66 = arith.sitofp %65 : vector<48x1xi32> to vector<48x1xf32>
    %c0_30 = arith.constant 0 : index
    %c0_31 = arith.constant 0 : index
    %67 = vector.load %arg8[%c0_30, %c0_31] : memref<6x48xf32, #tpu.memory_space<vmem>>, vector<6x48xf32>
    %cst_32 = arith.constant dense<0.000000e+00> : vector<6x1xf32>
    %68 = tpu.matmul %67, %66, %cst_32 {dimension_numbers = #tpu.dot_dimension_numbers<[1], [0], [0], [1], [0, 0, 1, 1], [], []>} : vector<6x48xf32>, vector<48x1xf32>, vector<6x1xf32> -> vector<6x1xf32>
    %c0_33 = arith.constant 0 : index
    %c0_34 = arith.constant 0 : index
    %69 = vector.load %arg9[%c0_33, %c0_34] : memref<3x6xf32, #tpu.memory_space<vmem>>, vector<3x6xf32>
    %c0_35 = arith.constant 0 : index
    %c0_36 = arith.constant 0 : index
    %70 = vector.load %arg6[%c0_35, %c0_36] : memref<6x1xf32, #tpu.memory_space<vmem>>, vector<6x1xf32>
    %71 = arith.subf %68, %70 : vector<6x1xf32>
    %72 = math.absf %71 : vector<6x1xf32>
    %cst_37 = arith.constant dense<0.000000e+00> : vector<3x1xf32>
    %73 = tpu.matmul %69, %72, %cst_37 {dimension_numbers = #tpu.dot_dimension_numbers<[1], [0], [0], [1], [0, 0, 1, 1], [], []>} : vector<3x6xf32>, vector<6x1xf32>, vector<3x1xf32> -> vector<3x1xf32>
    %c0_38 = arith.constant 0 : index
    %c0_39 = arith.constant 0 : index
    %74 = vector.load %arg4[%c0_38, %c0_39] : memref<18x4xf32, #tpu.memory_space<vmem>>, vector<18x4xf32>
    %c0_40 = arith.constant 0 : index
    %c0_41 = arith.constant 0 : index
    %75 = vector.load %arg5[%c0_40, %c0_41] : memref<18x4xf32, #tpu.memory_space<vmem>>, vector<18x4xf32>
    %76 = arith.subf %74, %75 : vector<18x4xf32>
    %77 = math.absf %76 : vector<18x4xf32>
    %c0_42 = arith.constant 0 : index
    %c0_43 = arith.constant 0 : index
    %78 = vector.load %arg10[%c0_42, %c0_43] : memref<3x18xf32, #tpu.memory_space<vmem>>, vector<3x18xf32>
    %cst_44 = arith.constant dense<0.000000e+00> : vector<18xf32>
    %79 = vector.multi_reduction <add>, %77, %cst_44 [1] : vector<18x4xf32> to vector<18xf32>
    %80 = vector.shape_cast %79 : vector<18xf32> to vector<18x1xf32>
    %cst_45 = arith.constant dense<0.000000e+00> : vector<3x1xf32>
    %81 = tpu.matmul %78, %80, %cst_45 {dimension_numbers = #tpu.dot_dimension_numbers<[1], [0], [0], [1], [0, 0, 1, 1], [], []>} : vector<3x18xf32>, vector<18x1xf32>, vector<3x1xf32> -> vector<3x1xf32>
    %82 = vector.extract_strided_slice %77 {offsets = [0, 0], sizes = [18, 2], strides = [1, 1]} : vector<18x4xf32> to vector<18x2xf32>
    %cst_46 = arith.constant dense<0.000000e+00> : vector<18xf32>
    %83 = vector.multi_reduction <add>, %82, %cst_46 [1] : vector<18x2xf32> to vector<18xf32>
    %84 = vector.shape_cast %83 : vector<18xf32> to vector<18x1xf32>
    %cst_47 = arith.constant dense<0.000000e+00> : vector<3x1xf32>
    %85 = tpu.matmul %78, %84, %cst_47 {dimension_numbers = #tpu.dot_dimension_numbers<[1], [0], [0], [1], [0, 0, 1, 1], [], []>} : vector<3x18xf32>, vector<18x1xf32>, vector<3x1xf32> -> vector<3x1xf32>
    %86 = vector.extract_strided_slice %77 {offsets = [0, 2], sizes = [18, 2], strides = [1, 1]} : vector<18x4xf32> to vector<18x2xf32>
    %cst_48 = arith.constant dense<0.000000e+00> : vector<18xf32>
    %87 = vector.multi_reduction <add>, %86, %cst_48 [1] : vector<18x2xf32> to vector<18xf32>
    %88 = vector.shape_cast %87 : vector<18xf32> to vector<18x1xf32>
    %cst_49 = arith.constant dense<0.000000e+00> : vector<3x1xf32>
    %89 = tpu.matmul %78, %88, %cst_49 {dimension_numbers = #tpu.dot_dimension_numbers<[1], [0], [0], [1], [0, 0, 1, 1], [], []>} : vector<3x18xf32>, vector<18x1xf32>, vector<3x1xf32> -> vector<3x1xf32>
    %90 = vector.extract_strided_slice %74 {offsets = [0, 0], sizes = [18, 1], strides = [1, 1]} : vector<18x4xf32> to vector<18x1xf32>
    %91 = vector.extract_strided_slice %74 {offsets = [0, 1], sizes = [18, 1], strides = [1, 1]} : vector<18x4xf32> to vector<18x1xf32>
    %92 = vector.extract_strided_slice %74 {offsets = [0, 2], sizes = [18, 1], strides = [1, 1]} : vector<18x4xf32> to vector<18x1xf32>
    %93 = vector.extract_strided_slice %74 {offsets = [0, 3], sizes = [18, 1], strides = [1, 1]} : vector<18x4xf32> to vector<18x1xf32>
    %cst_50 = arith.constant 5.000000e-01 : f32
    %94 = vector.broadcast %cst_50 : f32 to vector<18x1xf32>
    %95 = arith.mulf %94, %92 : vector<18x1xf32>
    %96 = arith.subf %90, %95 : vector<18x1xf32>
    %cst_51 = arith.constant 5.000000e-01 : f32
    %97 = vector.broadcast %cst_51 : f32 to vector<18x1xf32>
    %98 = arith.mulf %97, %93 : vector<18x1xf32>
    %99 = arith.subf %91, %98 : vector<18x1xf32>
    %cst_52 = arith.constant 5.000000e-01 : f32
    %100 = vector.broadcast %cst_52 : f32 to vector<18x1xf32>
    %101 = arith.mulf %100, %92 : vector<18x1xf32>
    %102 = arith.addf %90, %101 : vector<18x1xf32>
    %cst_53 = arith.constant 5.000000e-01 : f32
    %103 = vector.broadcast %cst_53 : f32 to vector<18x1xf32>
    %104 = arith.mulf %103, %93 : vector<18x1xf32>
    %105 = arith.addf %91, %104 : vector<18x1xf32>
    %106 = vector.extract_strided_slice %75 {offsets = [0, 0], sizes = [18, 1], strides = [1, 1]} : vector<18x4xf32> to vector<18x1xf32>
    %107 = vector.extract_strided_slice %75 {offsets = [0, 1], sizes = [18, 1], strides = [1, 1]} : vector<18x4xf32> to vector<18x1xf32>
    %108 = vector.extract_strided_slice %75 {offsets = [0, 2], sizes = [18, 1], strides = [1, 1]} : vector<18x4xf32> to vector<18x1xf32>
    %109 = vector.extract_strided_slice %75 {offsets = [0, 3], sizes = [18, 1], strides = [1, 1]} : vector<18x4xf32> to vector<18x1xf32>
    %cst_54 = arith.constant 5.000000e-01 : f32
    %110 = vector.broadcast %cst_54 : f32 to vector<18x1xf32>
    %111 = arith.mulf %110, %108 : vector<18x1xf32>
    %112 = arith.subf %106, %111 : vector<18x1xf32>
    %cst_55 = arith.constant 5.000000e-01 : f32
    %113 = vector.broadcast %cst_55 : f32 to vector<18x1xf32>
    %114 = arith.mulf %113, %109 : vector<18x1xf32>
    %115 = arith.subf %107, %114 : vector<18x1xf32>
    %cst_56 = arith.constant 5.000000e-01 : f32
    %116 = vector.broadcast %cst_56 : f32 to vector<18x1xf32>
    %117 = arith.mulf %116, %108 : vector<18x1xf32>
    %118 = arith.addf %106, %117 : vector<18x1xf32>
    %cst_57 = arith.constant 5.000000e-01 : f32
    %119 = vector.broadcast %cst_57 : f32 to vector<18x1xf32>
    %120 = arith.mulf %119, %109 : vector<18x1xf32>
    %121 = arith.addf %107, %120 : vector<18x1xf32>
    %122 = arith.subf %102, %96 : vector<18x1xf32>
    %123 = arith.subf %105, %99 : vector<18x1xf32>
    %124 = arith.mulf %122, %123 : vector<18x1xf32>
    %125 = arith.subf %118, %112 : vector<18x1xf32>
    %126 = arith.subf %121, %115 : vector<18x1xf32>
    %127 = arith.mulf %125, %126 : vector<18x1xf32>
    %128 = arith.minimumf %102, %118 : vector<18x1xf32>
    %129 = arith.maximumf %96, %112 : vector<18x1xf32>
    %130 = arith.subf %128, %129 : vector<18x1xf32>
    %cst_58 = arith.constant 0.000000e+00 : f32
    %131 = vector.broadcast %cst_58 : f32 to vector<18x1xf32>
    %132 = arith.maximumf %130, %131 : vector<18x1xf32>
    %133 = arith.minimumf %105, %121 : vector<18x1xf32>
    %134 = arith.maximumf %99, %115 : vector<18x1xf32>
    %135 = arith.subf %133, %134 : vector<18x1xf32>
    %cst_59 = arith.constant 0.000000e+00 : f32
    %136 = vector.broadcast %cst_59 : f32 to vector<18x1xf32>
    %137 = arith.maximumf %135, %136 : vector<18x1xf32>
    %138 = arith.mulf %132, %137 : vector<18x1xf32>
    %139 = arith.addf %124, %127 : vector<18x1xf32>
    %140 = arith.subf %139, %138 : vector<18x1xf32>
    %141 = arith.divf %138, %140 : vector<18x1xf32>
    %142 = arith.maximumf %102, %118 : vector<18x1xf32>
    %143 = arith.minimumf %96, %112 : vector<18x1xf32>
    %144 = arith.subf %142, %143 : vector<18x1xf32>
    %cst_60 = arith.constant 0.000000e+00 : f32
    %145 = vector.broadcast %cst_60 : f32 to vector<18x1xf32>
    %146 = arith.maximumf %144, %145 : vector<18x1xf32>
    %147 = arith.maximumf %105, %121 : vector<18x1xf32>
    %148 = arith.minimumf %99, %115 : vector<18x1xf32>
    %149 = arith.subf %147, %148 : vector<18x1xf32>
    %cst_61 = arith.constant 0.000000e+00 : f32
    %150 = vector.broadcast %cst_61 : f32 to vector<18x1xf32>
    %151 = arith.maximumf %149, %150 : vector<18x1xf32>
    %152 = arith.mulf %146, %151 : vector<18x1xf32>
    %153 = arith.subf %152, %140 : vector<18x1xf32>
    %154 = arith.divf %153, %152 : vector<18x1xf32>
    %155 = arith.subf %141, %154 : vector<18x1xf32>
    %cst_62 = arith.constant 1.000000e+00 : f32
    %156 = vector.broadcast %cst_62 : f32 to vector<18x1xf32>
    %157 = arith.subf %156, %155 : vector<18x1xf32>
    %cst_63 = arith.constant dense<0.000000e+00> : vector<3x1xf32>
    %158 = tpu.matmul %78, %157, %cst_63 {dimension_numbers = #tpu.dot_dimension_numbers<[1], [0], [0], [1], [0, 0, 1, 1], [], []>} : vector<3x18xf32>, vector<18x1xf32>, vector<3x1xf32> -> vector<3x1xf32>
    %c0_64 = arith.constant 0 : index
    %c0_65 = arith.constant 0 : index
    %159 = vector.load %arg12[%c0_64, %c0_65] : memref<8x8xf32, #tpu.memory_space<vmem>>, vector<8x8xf32>
    %160 = vector.extract_strided_slice %159 {offsets = [0, 0], sizes = [1, 8], strides = [1, 1]} : vector<8x8xf32> to vector<1x8xf32>
    %161 = vector.broadcast %43 : vector<3x1xf32> to vector<3x8xf32>
    %162 = vector.broadcast %160 : vector<1x8xf32> to vector<3x8xf32>
    %163 = arith.mulf %161, %162 : vector<3x8xf32>
    %164 = vector.extract_strided_slice %159 {offsets = [1, 0], sizes = [1, 8], strides = [1, 1]} : vector<8x8xf32> to vector<1x8xf32>
    %165 = vector.broadcast %59 : vector<3x1xf32> to vector<3x8xf32>
    %166 = vector.broadcast %164 : vector<1x8xf32> to vector<3x8xf32>
    %167 = arith.mulf %165, %166 : vector<3x8xf32>
    %168 = arith.addf %163, %167 : vector<3x8xf32>
    %169 = vector.extract_strided_slice %159 {offsets = [2, 0], sizes = [1, 8], strides = [1, 1]} : vector<8x8xf32> to vector<1x8xf32>
    %170 = vector.broadcast %73 : vector<3x1xf32> to vector<3x8xf32>
    %171 = vector.broadcast %169 : vector<1x8xf32> to vector<3x8xf32>
    %172 = arith.mulf %170, %171 : vector<3x8xf32>
    %173 = arith.addf %168, %172 : vector<3x8xf32>
    %174 = vector.extract_strided_slice %159 {offsets = [3, 0], sizes = [1, 8], strides = [1, 1]} : vector<8x8xf32> to vector<1x8xf32>
    %175 = vector.broadcast %81 : vector<3x1xf32> to vector<3x8xf32>
    %176 = vector.broadcast %174 : vector<1x8xf32> to vector<3x8xf32>
    %177 = arith.mulf %175, %176 : vector<3x8xf32>
    %178 = arith.addf %173, %177 : vector<3x8xf32>
    %179 = vector.extract_strided_slice %159 {offsets = [4, 0], sizes = [1, 8], strides = [1, 1]} : vector<8x8xf32> to vector<1x8xf32>
    %180 = vector.broadcast %158 : vector<3x1xf32> to vector<3x8xf32>
    %181 = vector.broadcast %179 : vector<1x8xf32> to vector<3x8xf32>
    %182 = arith.mulf %180, %181 : vector<3x8xf32>
    %183 = arith.addf %178, %182 : vector<3x8xf32>
    %184 = vector.extract_strided_slice %159 {offsets = [5, 0], sizes = [1, 8], strides = [1, 1]} : vector<8x8xf32> to vector<1x8xf32>
    %185 = vector.broadcast %85 : vector<3x1xf32> to vector<3x8xf32>
    %186 = vector.broadcast %184 : vector<1x8xf32> to vector<3x8xf32>
    %187 = arith.mulf %185, %186 : vector<3x8xf32>
    %188 = arith.addf %183, %187 : vector<3x8xf32>
    %189 = vector.extract_strided_slice %159 {offsets = [6, 0], sizes = [1, 8], strides = [1, 1]} : vector<8x8xf32> to vector<1x8xf32>
    %190 = vector.broadcast %89 : vector<3x1xf32> to vector<3x8xf32>
    %191 = vector.broadcast %189 : vector<1x8xf32> to vector<3x8xf32>
    %192 = arith.mulf %190, %191 : vector<3x8xf32>
    %193 = arith.addf %188, %192 : vector<3x8xf32>
    %c0_66 = arith.constant 0 : index
    %c0_67 = arith.constant 0 : index
    %194 = vector.load %arg13[%c0_66, %c0_67] : memref<3x8xf32, #tpu.memory_space<vmem>>, vector<3x8xf32>
    tpu.vector_store %arg13[%c0_66, %c0_67], %193 {strides = array<i32>} : memref<3x8xf32, #tpu.memory_space<vmem>>, vector<3x8xf32>,
    return
  }
}

</mosaic_0001>

<bundles_post_ra>
// kernel: tpu_custom_call.1
= control target key start
LH: loop header
LB: loop body
LE: loop exit
PB: predicated region body
PF: predicated region fallthrough
CT: control target
= control target key end

     0   :  { %vm443_vm0 = vcmask 121856   ;;  %vm340_vm1 = vcmask 123904   ;;  %s2031_s0 = inlined_call_operand.vmem [shape: f32[48,16], index: 0, kind: input, shape index: {}]   ;;  %s2032_s1 = inlined_call_operand.vmem [shape: f32[48,16], index: 1, kind: input, shape index: {}]   ;;  %s2033_s2 = inlined_call_operand.vmem [shape: f32[18,16], index: 2, kind: input, shape index: {}]   ;;  %s2034_s3 = inlined_call_operand.vmem [shape: f32[18,16], index: 3, kind: input, shape index: {}]   ;;  %s2035_s4 = inlined_call_operand.vmem [shape: f32[18,4], index: 4, kind: input, shape index: {}]   ;;  %s2036_s5 = inlined_call_operand.vmem [shape: f32[18,4], index: 5, kind: input, shape index: {}]   ;;  %s2037_s6 = inlined_call_operand.vmem [shape: f32[6,1], index: 6, kind: input, shape index: {}]   ;;  %s2038_s7 = inlined_call_operand.vmem [shape: f32[3,48], index: 7, kind: input, shape index: {}]   ;;  %s2039_s8 = inlined_call_operand.vmem [shape: f32[6,48], index: 8, kind: input, shape index: {}]   ;;  %s2040_s9 = inlined_call_operand.vmem [shape: f32[3,6], index: 9, kind: input, shape index: {}]   ;;  %s2041_s10 = inlined_call_operand.vmem [shape: f32[3,18], index: 10, kind: input, shape index: {}]   ;;  %s2042_s11 = inlined_call_operand.vmem [shape: f32[3,18], index: 11, kind: input, shape index: {}]   ;;  %s2043_s12 = inlined_call_operand.vmem [shape: f32[8,8], index: 12, kind: input, shape index: {}]   ;;  %s2044_s13 = inlined_call_operand.hbm [shape: f32[3,8], index: 13, kind: output, shape index: {}]  }
   0x1   :  { %v1592_v0 = vld [vmem:[%s2031_s0 + $0x28] sm:$0xff]  ;;  %v1597_v1 = vld [vmem:[%s2031_s0 + $0x18] sm:$0xff]  ;;  %v1602_v2 = vld [vmem:[%s2031_s0 + $0x20] sm:$0xff] }
   0x2   :  { %v459_v3 = vsel %vm443_vm0, %v1592_v0, -inf  ;;  %v453_v4 = vsel %vm443_vm0, %v1597_v1, -inf  ;;  %v1609_v5 = vld [vmem:[%s2031_s0 + $0x10] sm:$0xff]  ;;  %v456_v6 = vsel %vm443_vm0, %v1602_v2, -inf  ;;  %v1616_v8 = vld [vmem:[%s2031_s0 + $0x8] sm:$0xff]  ;;  %v1621_v9 = vld [vmem:[%s2031_s0] sm:$0xff] }
   0x3   :  { %460 = vmax.xlane.f32.xlu0 %v459_v3  ;;  %454 = vmax.xlane.f32.xlu1 %v453_v4  ;;  %v450_v7 = vsel %vm443_vm0, %v1609_v5, -inf  ;;  %v447_v10 = vsel %vm443_vm0, %v1616_v8, -inf  ;;  %v444_v11 = vsel %vm443_vm0, %v1621_v9, -inf  ;;  %v326_v12 = vld [vmem:[%s2033_s2 + $0x8] sm:$0xff]  ;;  %v327_v13 = vld [vmem:[%s2033_s2 + $0x10] sm:$0x3] }
   0x4   :  { %v330_v14 = vld [vmem:[%s2034_s3 + $0x10] sm:$0x3]  ;;  %v329_v15 = vld [vmem:[%s2034_s3 + $0x8] sm:$0xff] }
   0x5   :  { %v333_v16 = vmul.f32 %v330_v14, %v327_v13 }
   0x7   :  { %457 = vmax.xlane.f32.xlu0 %v456_v6  ;;  %451 = vmax.xlane.f32.xlu1 %v450_v7 }
   0x8   :  { %18 = vsyncpa [#allocation3], 0  ;;  %v341_v17 = vsel %vm340_vm1, %v333_v16, 0.0  ;;  %v350_v18 = vsel %vm340_vm1, %v327_v13, -inf  ;;  %v332_v19 = vmul.f32 %v329_v15, %v326_v12  ;;  %v1511_v20 = vmov 0.0   ;;  %v325_v21 = vld [vmem:[%s2033_s2] sm:$0xff] }
   0x9   :  { %1339 = vmatprep.subr.mxu1 %v1511_v20  ;;  %1324 = vmatprep.subr.mxu0 %v1511_v20  ;;  %vm231_vm2 = vcmask 130048   ;;  %v328_v22 = vld [vmem:[%s2034_s3] sm:$0xff]  ;;  %v62_v28 = vsub.f32 0.0, %v1592_v0  ;;  %v116_v29 = vand.u32 2147483647, %v1592_v0  ;;  %v61_v33 = vsub.f32 0.0, %v1602_v2 }
   0xa   :  { %v337_v23 = vsel %vm231_vm2, %v332_v19, 0.0  ;;  %v347_v24 = vsel %vm231_vm2, %v326_v12, -inf  ;;  %v331_v25 = vmul.f32 %v328_v22, %v325_v21  ;;  %v344_v27 = vsel %vm231_vm2, %v325_v21, -inf  ;;  %v1668_v47 = vld [vmem:[%s2036_s5 + $0x10] sm:$0x3]  ;;  %s1513_s14 = smov 113  }
   0xb   :  { %448 = vmax.xlane.f32.xlu0 %v447_v10  ;;  %445 = vmax.xlane.f32.xlu1 %v444_v11  ;;  %v73_v30 = vmul.f32 1.442695, %v62_v28  ;;  %v122_v31 = vsub.f32 0.0, %v116_v29  ;;  %v115_v34 = vand.u32 2147483647, %v1602_v2  ;;  %vm1512_vm3 = vmmov 0  }
   0xc   :  { %v334_v26 = vsel %vm231_vm2, %v331_v25, 0.0  ;;  %1345 = vmatprep.mubr.msk.f32.mxu1 %vm1512_vm3, %v1511_v20  ;;  %1336 = vmatprep.mubr.msk.f32.mxu0 %vm1512_vm3, %v1511_v20  ;;  %v71_v37 = vmul.f32 1.442695, %v61_v33  ;;  %v961_v52 = vmul.f32 0.5, %v1668_v47  ;;  %v1676_v53 = vld [vmem:[%s2035_s4 + $0x10] sm:$0x3] }
   0xd   :  { %1429 = vpow2.f32 %v73_v30  ;;  %v133_v32 = vmul.f32 1.442695, %v122_v31  ;;  %v121_v38 = vsub.f32 0.0, %v115_v34  ;;  %v1683_v58 = vld [vmem:[%s2036_s5 + $0x8] sm:$0xff]  ;;  %v940_v60 = vmul.f32 0.5, %v1676_v53  ;;  %s1514_s19 = smov 126  }
   0xe   :  { %vm367_vm10 = vcmask 1041408   ;;  %v1690_v63 = vld [vmem:[%s2035_s4 + $0x8] sm:$0xff]  ;;  %v960_v3 = vmul.f32 0.5, %v1683_v58  ;;  %v1699_v10 = vld [vmem:[%s2036_s5] sm:$0xff]  ;;  %vm363_vm13 = vcmask 146432   ;;  %s1516_s28 = smov 127  }
   0xf   :  { %342 = vadd.xlane.f32.xlu0 %v341_v17  ;;  %351 = vmax.xlane.f32.xlu1 %v350_v18  ;;  %1431 = vpow2.f32 %v133_v32  ;;  %v131_v41 = vmul.f32 1.442695, %v121_v38  ;;  %v939_v7 = vmul.f32 0.5, %v1690_v63  ;;  %v959_v13 = vmul.f32 0.5, %v1699_v10  ;;  %v1710_v16 = vld [vmem:[%s2035_s4] sm:$0xff]  ;;  %v56_v29 = vld [vmem:[%s2032_s1 + $0x28] sm:$0xff] }
  0x10   :  { %1433 = vpow2.f32 %v71_v37  ;;  %v667_v14 = vsub.f32 %v1690_v63, %v1683_v58  ;;  %v1515_v17 = vmov 1.0   ;;  %v362_v21 = vld [vmem:[%s2042_s11] sm:$0x7]  ;;  %v938_v22 = vmul.f32 0.5, %v1710_v16 }
  0x11   :  { %1435 = vpow2.f32 %v131_v41  ;;  %v666_v28 = vsub.f32 %v1710_v16, %v1699_v10  ;;  %v98_v32 = vmax.f32 %v1592_v0, 0.0  ;;  %v104_v33 = vmul.f32 %v56_v29, %v1592_v0 }
  0x12   :  { %vm251_vm15 = vcmask 392192   ;;  %vm767_vm0 = vcmask 9216   ;;  %vm760_vm1 = vcmask 15360  }
  0x13   :  { %338 = vadd.xlane.f32.xlu0 %v337_v23  ;;  %348 = vmax.xlane.f32.xlu1 %v347_v24  ;;  %v668_v23 = vsub.f32 %v1676_v53, %v1668_v47  ;;  %v1721_v24 = vand.u32 2147483647, %v667_v14  ;;  %v1741_v34 = vand.u32 2147483647, %v666_v28  ;;  %v110_v38 = vsub.f32 %v98_v32, %v104_v33 }
  0x14   :  { %v113_v28 = vand.u32 2147483647, %v1609_v5 }
  0x17   :  { %335 = vadd.xlane.f32.xlu0 %v334_v26  ;;  %345 = vmax.xlane.f32.xlu1 %v344_v27  ;;  %v1728_v27 = vand.u32 2147483647, %v668_v23 }
  0x1a   :  { %v1430_v42 = vpop.eup %1429 }
  0x1b   :  { %v80_v54 = vadd.f32 1.0, %v1430_v42 }
  0x1c   :  { %v1432_v55 = vpop.eup %1431 }
  0x1d   :  { %1437 = vrcp.f32 %v80_v54  ;;  %v140_v4 = vadd.f32 1.0, %v1432_v55  ;;  %v1434_v15 = vpop.eup %1433 }
  0x1e   :  { %v79_v25 = vadd.f32 1.0, %v1434_v15  ;;  %v1436_v26 = vpop.eup %1435 }
  0x1f   :  { %1439 = vlog2.f32 %v140_v4  ;;  %v139_v31 = vadd.f32 1.0, %v1436_v26  ;;  %v59_v26 = vsub.f32 0.0, %v1609_v5 }
  0x20   :  { %1441 = vrcp.f32 %v79_v25 }
  0x21   :  { %1443 = vlog2.f32 %v139_v31  ;;  %v119_v31 = vsub.f32 0.0, %v113_v28 }
  0x2a   :  { %v1438_v30 = vpop.eup %1437 }
  0x2b   :  { %v164_v41 = vmul.f32 %v1438_v30, %v56_v29 }
  0x2c   :  { %v1440_v37 = vpop.eup %1439 }
  0x8c   :  { %v461_v35 = vpop.xlane.xlu0 %460  ;;  %v455_v36 = vpop.xlane.xlu1 %454 }
  0x8d   :  { %vm467_vm4 = vcmp.ge.f32.partialorder %v461_v35, %v1592_v0  ;;  %vm465_vm5 = vcmp.ge.f32.partialorder %v455_v36, %v1597_v1  ;;  %v170_v35 = vsub.f32 1.0, %v1438_v30  ;;  %v176_v36 = vsub.f32 1.0, %v56_v29 }
  0x8e   :  { %v1276_v43 = vsel %vm467_vm4, 1.0, %v1511_v20  ;;  %v1274_v44 = vsel %vm465_vm5, 1.0, %v1511_v20  ;;  %v67_v30 = vmul.f32 1.442695, %v59_v26  ;;  %vm680_vm4 = vcmask 25600  }
  0x8f   :  { %v182_v42 = vmul.f32 %v176_v36, %v170_v35  ;;  %v127_v35 = vmul.f32 1.442695, %v119_v31  ;;  %vm586_vm5 = vcmask 1045504  }
  0x90   :  { %v458_v39 = vpop.xlane.xlu0 %457  ;;  %v452_v40 = vpop.xlane.xlu1 %451 }
  0x91   :  { %vm466_vm6 = vcmp.ge.f32.partialorder %v458_v39, %v1602_v2  ;;  %vm464_vm7 = vcmp.ge.f32.partialorder %v452_v40, %v1609_v5  ;;  %v200_v39 = vmul.f32 0.25, %v56_v29  ;;  %v152_v40 = vmul.f32 0.6931472, %v1440_v37 }
  0x92   :  { %v1275_v45 = vsel %vm466_vm6, 1.0, %v1511_v20  ;;  %v1273_v46 = vsel %vm464_vm7, 1.0, %v1511_v20  ;;  %v188_v0 = vadd.f32 %v182_v42, %v164_v41  ;;  %vm582_vm6 = vcmask 48128  }
  0x93   :  { %v1412_v48 = vpack.i.bf16 %v1275_v45, %v1276_v43  ;;  %v1417_v49 = vpack.i.bf16 %v1273_v46, %v1274_v44  ;;  %v206_v43 = vmul.f32 0.75, %v176_v36  ;;  %v158_v44 = vadd.f32 %v152_v40, %v110_v38  ;;  %v55_v46 = vld [vmem:[%s2032_s1 + $0x20] sm:$0xff] }
  0x94   :  { %v449_v50 = vpop.xlane.xlu0 %448  ;;  %v446_v51 = vpop.xlane.xlu1 %445  ;;  %v175_v55 = vsub.f32 1.0, %v55_v46 }
  0x95   :  { %vm463_vm8 = vcmp.ge.f32.partialorder %v449_v50, %v1616_v8  ;;  %vm462_vm9 = vcmp.ge.f32.partialorder %v446_v51, %v1621_v9  ;;  %1413 = vrot.lane.b32.xlu0 %v1412_v48, %s1513_s14  ;;  %1418 = vrot.lane.b32.xlu1 %v1417_v49, %s1513_s14  ;;  %v212_v45 = vadd.f32 %v206_v43, %v200_v39  ;;  %v1442_v48 = vpop.eup %1441  ;;  %v97_v49 = vmax.f32 %v1602_v2, 0.0 }
  0x96   :  { %v1272_v56 = vsel %vm463_vm8, 1.0, %v1511_v20  ;;  %v1271_v57 = vsel %vm462_vm9, 1.0, %v1511_v20  ;;  %v103_v50 = vmul.f32 %v55_v46, %v1602_v2  ;;  %v194_v51 = vsub.f32 1.0, %v188_v0 }
  0x97   :  { %v1422_v59 = vpack.i.bf16 %v1271_v57, %v1272_v56  ;;  %v169_v54 = vsub.f32 1.0, %v1442_v48  ;;  %v1444_v56 = vpop.eup %1443  ;;  %v205_v4 = vmul.f32 0.75, %v175_v55 }
  0x98   :  { %v343_v61 = vpop.xlane.xlu0 %342  ;;  %v352_v62 = vpop.xlane.xlu1 %351  ;;  %v109_v57 = vsub.f32 %v97_v49, %v103_v50 }
  0x99   :  { %969 = vrot.lane.b32.xlu0 %v961_v52, %s1514_s19  ;;  %1423 = vrot.lane.b32.xlu1 %v1422_v59, %s1513_s14  ;;  %vm355_vm11 = vcmp.ge.f32.partialorder %v343_v61, %v352_v62  ;;  %v218_v52 = vmul.f32 %v212_v45, %v158_v44  ;;  %v199_v59 = vmul.f32 0.25, %v55_v46  ;;  %v150_v61 = vmul.f32 0.6931472, %v1444_v56 }
  0x9a   :  { %v1266_v6 = vsel %vm355_vm11, 1.0, %v1511_v20  ;;  %v163_v62 = vmul.f32 %v1442_v48, %v55_v46 }
  0x9b   :  { %1340 = vmatpush3.msk.msra.mxu1 %vm367_vm10, %v1266_v6 }
  0x9c   :  { %v339_v11 = vpop.xlane.xlu0 %338  ;;  %v349_v12 = vpop.xlane.xlu1 %348  ;;  %1341 = vmatprep.subr.mxu1 %v1511_v20 }
  0x9d   :  { %948 = vrot.lane.b32.xlu1 %v940_v60, %s1514_s19  ;;  %967 = vrot.lane.b32.xlu0 %v960_v3, %s1514_s19  ;;  %vm354_vm12 = vcmp.ge.f32.partialorder %v339_v11, %v349_v12  ;;  %v224_v60 = vmul.f32 %v218_v52, %v194_v51  ;;  %v181_v3 = vmul.f32 %v175_v55, %v169_v54  ;;  %v480_v54 = vld [vmem:[%s2039_s8] sm:$0x3f] }
  0x9e   :  { %1342 = vmatpush3.msk.msra.mxu1 %vm354_vm12, %v1515_v17  ;;  %v211_v12 = vadd.f32 %v205_v4, %v199_v59 }
  0x9f   :  { %1343 = vmatprep.subr.mxu1 %v1511_v20  ;;  %v230_v6 = vmul.f32 %v224_v60, %v194_v51  ;;  %v187_v11 = vadd.f32 %v181_v3, %v163_v62  ;;  %v54_v62 = vld [vmem:[%s2032_s1 + $0x18] sm:$0xff] }
  0xa0   :  { %v336_v18 = vpop.xlane.xlu0 %335  ;;  %v346_v19 = vpop.xlane.xlu1 %345 }
  0xa1   :  { %946 = vrot.lane.b32.xlu1 %v939_v7, %s1514_s19  ;;  %965 = vrot.lane.b32.xlu0 %v959_v13, %s1514_s19  ;;  %vm353_vm14 = vcmp.ge.f32.partialorder %v336_v18, %v346_v19  ;;  %v157_v7 = vadd.f32 %v150_v61, %v109_v57  ;;  %v247_v13 = vsel %vm231_vm2, %v230_v6, 0.0  ;;  %v193_v14 = vsub.f32 1.0, %v187_v11 }
  0xa2   :  { %1344 = vmatpush3.msk.msra.mxu1 %vm353_vm14, %v1515_v17  ;;  %v60_v19 = vsub.f32 0.0, %v1597_v1 }
  0xa3   :  { %1348 = vmatprep.subr.mxu1 %v1511_v20  ;;  %1346 = vmatmul.mubr.msk.f32.vlgmr.msra.gmra.mxu1 %vm363_vm13, %v362_v21  ;;  %v217_v2 = vmul.f32 %v211_v12, %v157_v7  ;;  %v114_v21 = vand.u32 2147483647, %v1597_v1 }
  0xa4   :  { %1360 = vmatprep.mubr.msk.f32.mxu1 %vm1512_vm3, %v1511_v20 }
  0xa5   :  { %944 = vrot.lane.b32.xlu1 %v938_v22, %s1514_s19  ;;  %849 = vrot.lane.b32.xlu0 %v1721_v24, %s1514_s19  ;;  %v223_v15 = vmul.f32 %v217_v2, %v193_v14  ;;  %v69_v22 = vmul.f32 1.442695, %v60_v19  ;;  %v120_v23 = vsub.f32 0.0, %v114_v21 }
  0xa7   :  { %v229_v17 = vmul.f32 %v223_v15, %v193_v14  ;;  %1445 = vpow2.f32 %v69_v22  ;;  %v129_v25 = vmul.f32 1.442695, %v120_v23  ;;  %v102_v14 = vmul.f32 %v54_v62, %v1597_v1 }
  0xa9   :  { %851 = vrot.lane.b32.xlu1 %v1728_v27, %s1514_s19  ;;  %v244_v18 = vsel %vm231_vm2, %v229_v17, 0.0  ;;  %1447 = vpow2.f32 %v129_v25  ;;  %v198_v25 = vmul.f32 0.25, %v54_v62 }
  0xaa   :  { %1449 = vpow2.f32 %v67_v30 }
  0xad   :  { %847 = vrot.lane.b32.xlu1 %v1741_v34, %s1514_s19 }
  0xb4   :  { %v1446_v29 = vpop.eup %1445 }
  0xb5   :  { %v78_v32 = vadd.f32 1.0, %v1446_v29 }
  0xb6   :  { %v1448_v33 = vpop.eup %1447 }
  0xb7   :  { %1451 = vrcp.f32 %v78_v32  ;;  %v138_v39 = vadd.f32 1.0, %v1448_v33  ;;  %v1450_v55 = vpop.eup %1449 }
  0xb8   :  { %1453 = vpow2.f32 %v127_v35  ;;  %v77_v6 = vadd.f32 1.0, %v1450_v55 }
  0xb9   :  { %1455 = vlog2.f32 %v138_v39  ;;  %v58_v39 = vsub.f32 0.0, %v1616_v8 }
  0xba   :  { %1457 = vrcp.f32 %v77_v6 }
  0xc4   :  { %248 = vadd.xlane.f32.xlu0 %v247_v13  ;;  %v1452_v3 = vpop.eup %1451  ;;  %v96_v13 = vmax.f32 %v1597_v1, 0.0 }
  0xc5   :  { %v168_v17 = vsub.f32 1.0, %v1452_v3  ;;  %v162_v26 = vmul.f32 %v1452_v3, %v54_v62 }
  0xc6   :  { %v108_v23 = vsub.f32 %v96_v13, %v102_v14 }
  0xd1   :  { %245 = vadd.xlane.f32.xlu1 %v244_v18  ;;  %v174_v18 = vsub.f32 1.0, %v54_v62 }
  0xd3   :  { %v180_v28 = vmul.f32 %v174_v18, %v168_v17  ;;  %v204_v29 = vmul.f32 0.75, %v174_v18  ;;  %v57_v18 = vsub.f32 0.0, %v1621_v9 }
  0xd5   :  { %v186_v32 = vadd.f32 %v180_v28, %v162_v26  ;;  %v210_v33 = vadd.f32 %v204_v29, %v198_v25  ;;  %v63_v25 = vmul.f32 1.442695, %v57_v18 }
  0xd7   :  { %v192_v35 = vsub.f32 1.0, %v186_v32 }
 0x107   :  { %v1414_v36 = vpop.permute.xlu0 %1413  ;;  %v1419_v37 = vpop.permute.xlu1 %1418 }
 0x108   :  { %v1415_v38 = vunpack.i.l.bf16 %v1414_v36  ;;  %v1416_v40 = vunpack.i.h.bf16 %v1414_v36  ;;  %v1420_v43 = vunpack.i.l.bf16 %v1419_v37  ;;  %v1421_v45 = vunpack.i.h.bf16 %v1419_v37  ;;  %v53_v37 = vld [vmem:[%s2032_s1 + $0x10] sm:$0xff] }
 0x109   :  { %v197_v55 = vmul.f32 0.25, %v53_v37 }
 0x10a   :  { %1349 = vmatpush3.msra.mxu1 %v1415_v38 }
 0x10b   :  { %v970_v41 = vpop.permute.xlu0 %969  ;;  %1350 = vmatprep.subr.mxu1 %v1511_v20  ;;  %v1424_v42 = vpop.permute.xlu1 %1423 }
 0x10c   :  { %v1758_v44 = vsub.f32 %v1668_v47, %v970_v41  ;;  %v1761_v0 = vadd.f32 %v970_v41, %v1668_v47  ;;  %1351 = vmatpush3.msra.mxu1 %v1416_v40  ;;  %v1425_v49 = vunpack.i.l.bf16 %v1424_v42  ;;  %v1426_v52 = vunpack.i.h.bf16 %v1424_v42 }
 0x10d   :  { %1352 = vmatprep.subr.mxu1 %v1511_v20  ;;  %v95_v41 = vmax.f32 %v1609_v5, 0.0  ;;  %v101_v42 = vmul.f32 %v53_v37, %v1609_v5 }
 0x10e   :  { %1353 = vmatpush3.msra.mxu1 %v1420_v43  ;;  %v1766_v46 = vsub.f32 %v1761_v0, %v1758_v44  ;;  %v173_v43 = vsub.f32 1.0, %v53_v37 }
 0x10f   :  { %v949_v48 = vpop.permute.xlu1 %948  ;;  %1354 = vmatprep.subr.mxu1 %v1511_v20  ;;  %v968_v51 = vpop.permute.xlu0 %967 }
 0x110   :  { %v1770_v50 = vsub.f32 %v1676_v53, %v949_v48  ;;  %v1773_v47 = vadd.f32 %v949_v48, %v1676_v53  ;;  %1008 = vrot.lane.b32.xlu1 %v1766_v46, %s1516_s28  ;;  %1355 = vmatpush3.msra.mxu1 %v1421_v45  ;;  %v1793_v60 = vsub.f32 %v1683_v58, %v968_v51  ;;  %v112_v45 = vand.u32 2147483647, %v1616_v8 }
 0x111   :  { %1356 = vmatprep.subr.mxu1 %v1511_v20  ;;  %v1796_v61 = vadd.f32 %v968_v51, %v1683_v58  ;;  %v1454_v58 = vpop.eup %1453  ;;  %v65_v51 = vmul.f32 1.442695, %v58_v39 }
 0x112   :  { %1357 = vmatpush3.msra.mxu1 %v1425_v49  ;;  %v1784_v53 = vsub.f32 %v1773_v47, %v1770_v50  ;;  %v1018_v7 = vmin.f32 %v1773_v47, %v1761_v0  ;;  %v1021_v11 = vmax.f32 %v1770_v50, %v1758_v44  ;;  %v1456_v19 = vpop.eup %1455  ;;  %v137_v21 = vadd.f32 1.0, %v1454_v58 }
 0x113   :  { %v947_v56 = vpop.permute.xlu1 %946  ;;  %1358 = vmatprep.subr.mxu1 %v1511_v20  ;;  %v1827_v15 = vsub.f32 %v1796_v61, %v1793_v60  ;;  %v148_v1 = vmul.f32 0.6931472, %v1456_v19  ;;  %v1458_v38 = vpop.eup %1457  ;;  %v111_v19 = vand.u32 2147483647, %v1621_v9 }
 0x114   :  { %v1787_v57 = vsub.f32 %v1690_v63, %v947_v56  ;;  %v1790_v59 = vadd.f32 %v947_v56, %v1690_v63  ;;  %1359 = vmatpush3.msra.mxu1 %v1426_v52  ;;  %990 = vrot.lane.b32.xlu0 %v1784_v53, %s1516_s28  ;;  %v1829_v22 = vsub.f32 %v1018_v7, %v1021_v11  ;;  %1459 = vlog2.f32 %v137_v21 }
 0x115   :  { %1361 = vmatmul.mubr.msk.f32.vlgmr.msra.gmra.mxu1 %vm251_vm15, %v480_v54  ;;  %1377 = vmatprep.subr.mxu1 %v1511_v20  ;;  %v156_v31 = vadd.f32 %v148_v1, %v108_v23  ;;  %v167_v48 = vsub.f32 1.0, %v1458_v38  ;;  %v107_v54 = vsub.f32 %v95_v41, %v101_v42  ;;  %v203_v56 = vmul.f32 0.75, %v173_v43 }
 0x116   :  { %v1056_v63 = vmax.f32 %v1790_v59, %v1796_v61  ;;  %v1059_v4 = vmin.f32 %v1787_v57, %v1793_v60  ;;  %v1815_v12 = vsub.f32 %v1790_v59, %v1787_v57  ;;  %1383 = vmatprep.mubr.msk.f32.mxu1 %vm1512_vm3, %v1511_v20  ;;  %v1027_v30 = vmax.f32 %v1829_v22, 0.0 }
 0x117   :  { %v216_v36 = vmul.f32 %v210_v33, %v156_v31  ;;  %v161_v3 = vmul.f32 %v1458_v38, %v53_v37  ;;  %1461 = vpow2.f32 %v65_v51  ;;  %v209_v5 = vadd.f32 %v203_v56, %v197_v55  ;;  %v945_v1 = vpop.permute.xlu1 %944  ;;  %v966_v38 = vpop.permute.xlu0 %965 }
 0x118   :  { %v1821_v2 = vsub.f32 %v1056_v63, %v1059_v4  ;;  %988 = vrot.lane.b32.xlu1 %v1815_v12, %s1516_s28  ;;  %v179_v63 = vmul.f32 %v173_v43, %v167_v48  ;;  %v118_v4 = vsub.f32 0.0, %v112_v45  ;;  %v117_v26 = vsub.f32 0.0, %v111_v19  ;;  %v52_v48 = vld [vmem:[%s2032_s1 + $0x8] sm:$0xff] }
 0x119   :  { %v222_v40 = vmul.f32 %v216_v36, %v192_v35  ;;  %v1849_v29 = vsub.f32 %v1710_v16, %v945_v1  ;;  %v1852_v31 = vadd.f32 %v945_v1, %v1710_v16  ;;  %v1017_v36 = vmin.f32 %v1790_v59, %v1796_v61 }
 0x11a   :  { %v185_v7 = vadd.f32 %v179_v63, %v161_v3  ;;  %v125_v11 = vmul.f32 1.442695, %v118_v4  ;;  %v1020_v37 = vmax.f32 %v1787_v57, %v1793_v60  ;;  %v1057_v16 = vmax.f32 %v1773_v47, %v1761_v0 }
 0x11b   :  { %v228_v52 = vmul.f32 %v222_v40, %v192_v35  ;;  %v123_v35 = vmul.f32 1.442695, %v117_v26  ;;  %v1860_v39 = vsub.f32 %v1852_v31, %v1849_v29  ;;  %v1060_v41 = vmin.f32 %v1770_v50, %v1758_v44  ;;  %v1868_v59 = vpop.permute.xlu0 %849  ;;  %v1890_v45 = vpop.permute.xlu1 %851 }
 0x11c   :  { %1006 = vrot.lane.b32.xlu1 %v1827_v15, %s1516_s28  ;;  %v191_v13 = vsub.f32 1.0, %v185_v7  ;;  %1463 = vpow2.f32 %v125_v11  ;;  %v1866_v42 = vsub.f32 %v1017_v36, %v1020_v37  ;;  %v1873_v57 = vsub.f32 %v1699_v10, %v966_v38 }
 0x11d   :  { %v241_v6 = vsel %vm231_vm2, %v228_v52, 0.0  ;;  %1465 = vpow2.f32 %v63_v25  ;;  %v1876_v60 = vadd.f32 %v966_v38, %v1699_v10  ;;  %v1879_v0 = vsub.f32 %v1057_v16, %v1060_v41 }
 0x11e   :  { %v1026_v61 = vmax.f32 %v1866_v42, 0.0  ;;  %v1019_v10 = vmax.f32 %v1849_v29, %v1873_v57  ;;  %v94_v56 = vmax.f32 %v1616_v8, 0.0  ;;  %v172_v63 = vsub.f32 1.0, %v52_v48  ;;  %v672_v42 = vld [vmem:[%s2041_s10] sm:$0x7] }
 0x11f   :  { %v1016_v50 = vmin.f32 %v1852_v31, %v1876_v60  ;;  %v1066_v43 = vmax.f32 %v1879_v0, 0.0  ;;  %v1908_v4 = vpop.permute.xlu1 %847  ;;  %v196_v11 = vmul.f32 0.25, %v52_v48  ;;  %v1065_v19 = vmax.f32 %v1821_v2, 0.0 }
 0x120   :  { %1035 = vrot.lane.b32.xlu1 %v1027_v30, %s1516_s28  ;;  %v761_v22 = vsel %vm760_vm1, %v1741_v34, 0.0 }
 0x121   :  { %v1460_v49 = vpop.eup %1459  ;;  %v1902_v55 = vsub.f32 %v1016_v50, %v1019_v10 }
 0x122   :  { %v146_v62 = vmul.f32 0.6931472, %v1460_v49 }
 0x123   :  { %v1025_v7 = vmax.f32 %v1902_v55, 0.0 }
 0x124   :  { %v155_v58 = vadd.f32 %v146_v62, %v107_v54  ;;  %v1462_v21 = vpop.eup %1461  ;;  %v1900_v54 = vsub.f32 %v1876_v60, %v1873_v57  ;;  %v100_v62 = vmul.f32 %v52_v48, %v1616_v8 }
 0x125   :  { %v76_v32 = vadd.f32 1.0, %v1462_v21 }
 0x126   :  { %v215_v14 = vmul.f32 %v209_v5, %v155_v58  ;;  %v106_v5 = vsub.f32 %v94_v56, %v100_v62 }
 0x127   :  { %1467 = vrcp.f32 %v76_v32  ;;  %v51_v32 = vld [vmem:[%s2032_s1] sm:$0xff] }
 0x128   :  { %v221_v17 = vmul.f32 %v215_v14, %v191_v13  ;;  %1469 = vpow2.f32 %v123_v35  ;;  %v93_v35 = vmax.f32 %v1621_v9, 0.0  ;;  %v99_v36 = vmul.f32 %v51_v32, %v1621_v9 }
 0x129   :  { %v1464_v33 = vpop.eup %1463  ;;  %v171_v38 = vsub.f32 1.0, %v51_v32  ;;  %v768_v9 = vsel %vm767_vm0, %v1728_v27, 0.0 }
 0x12a   :  { %v227_v23 = vmul.f32 %v221_v17, %v191_v13  ;;  %v136_v40 = vadd.f32 1.0, %v1464_v33  ;;  %v1466_v44 = vpop.eup %1465  ;;  %v202_v17 = vmul.f32 0.75, %v172_v63 }
 0x12b   :  { %v75_v51 = vadd.f32 1.0, %v1466_v44  ;;  %v105_v44 = vsub.f32 %v93_v35, %v99_v36  ;;  %v859_v36 = vsel %vm760_vm1, %v1868_v59, 0.0 }
 0x12c   :  { %v238_v28 = vsel %vm231_vm2, %v227_v23, 0.0  ;;  %1471 = vlog2.f32 %v136_v40  ;;  %v208_v25 = vadd.f32 %v202_v17, %v196_v11  ;;  %v1058_v11 = vmin.f32 %v1849_v29, %v1873_v57 }
 0x12d   :  { %1473 = vrcp.f32 %v75_v51 }
 0x133   :  { %242 = vadd.xlane.f32.xlu0 %v241_v6 }
 0x134   :  { %v1468_v49 = vpop.eup %1467 }
 0x135   :  { %v1470_v52 = vpop.eup %1469  ;;  %v166_v3 = vsub.f32 1.0, %v1468_v49  ;;  %v160_v8 = vmul.f32 %v1468_v49, %v52_v48  ;;  %v201_v48 = vmul.f32 0.75, %v171_v38 }
 0x136   :  { %v135_v58 = vadd.f32 1.0, %v1470_v52 }
 0x137   :  { %v178_v14 = vmul.f32 %v172_v63, %v166_v3 }
 0x138   :  { %1475 = vlog2.f32 %v135_v58 }
 0x139   :  { %v1472_v6 = vpop.eup %1471  ;;  %v184_v23 = vadd.f32 %v178_v14, %v160_v8 }
 0x13a   :  { %v144_v13 = vmul.f32 0.6931472, %v1472_v6 }
 0x13b   :  { %v190_v1 = vsub.f32 1.0, %v184_v23 }
 0x13c   :  { %v154_v21 = vadd.f32 %v144_v13, %v106_v5  ;;  %v1055_v5 = vmax.f32 %v1852_v31, %v1876_v60  ;;  %v764_v13 = vsel %vm760_vm1, %v1721_v24, 0.0 }
 0x13e   :  { %v214_v26 = vmul.f32 %v208_v25, %v154_v21  ;;  %v1934_v14 = vsub.f32 %v1055_v5, %v1058_v11 }
 0x140   :  { %v220_v33 = vmul.f32 %v214_v26, %v190_v1  ;;  %v1064_v29 = vmax.f32 %v1934_v14, 0.0 }
 0x142   :  { %v226_v16 = vmul.f32 %v220_v33, %v190_v1 }
 0x144   :  { %239 = vadd.xlane.f32.xlu1 %v238_v28  ;;  %v1474_v28 = vpop.eup %1473  ;;  %v235_v49 = vsel %vm231_vm2, %v226_v16, 0.0 }
 0x145   :  { %v165_v37 = vsub.f32 1.0, %v1474_v28  ;;  %v1476_v40 = vpop.eup %1475  ;;  %v159_v41 = vmul.f32 %v1474_v28, %v51_v32 }
 0x146   :  { %v142_v50 = vmul.f32 0.6931472, %v1476_v40 }
 0x147   :  { %v177_v10 = vmul.f32 %v171_v38, %v165_v37 }
 0x148   :  { %v153_v51 = vadd.f32 %v142_v50, %v105_v44 }
 0x149   :  { %986 = vrot.lane.b32.xlu0 %v1860_v39, %s1516_s28  ;;  %v183_v52 = vadd.f32 %v177_v10, %v159_v41 }
 0x14b   :  { %v189_v62 = vsub.f32 1.0, %v183_v52 }
 0x14d   :  { %v249_v47 = vpop.xlane.xlu0 %248  ;;  %1033 = vrot.lane.b32.xlu0 %v1026_v61, %s1516_s28 }
 0x14e   :  { %1325 = vmatpush3.msra.mxu0 %v249_v47  ;;  %v195_v47 = vmul.f32 0.25, %v51_v32 }
 0x14f   :  { %1326 = vmatprep.subr.mxu0 %v1511_v20 }
 0x150   :  { %v207_v56 = vadd.f32 %v201_v48, %v195_v47 }
 0x151   :  { %1074 = vrot.lane.b32.xlu0 %v1066_v43, %s1516_s28 }
 0x152   :  { %v213_v3 = vmul.f32 %v207_v56, %v153_v51  ;;  %v579_v56 = vld [vmem:[%s2037_s6] sm:$0x3f] }
 0x154   :  { %v219_v63 = vmul.f32 %v213_v3, %v189_v62  ;;  %v250_v3 = vld [vmem:[%s2038_s7] sm:$0x7] }
 0x155   :  { %1004 = vrot.lane.b32.xlu1 %v1900_v54, %s1516_s28 }
 0x156   :  { %v225_v6 = vmul.f32 %v219_v63, %v189_v62 }
 0x158   :  { %v232_v58 = vsel %vm231_vm2, %v225_v6, 0.0  ;;  %vm673_vm2 = vcmask 31744  }
 0x159   :  { %1031 = vrot.lane.b32.xlu1 %v1025_v7, %s1516_s28  ;;  %v677_v23 = vsel %vm673_vm2, %v1721_v24, 0.0  ;;  %v862_v24 = vsel %vm767_vm0, %v1890_v45, 0.0 }
 0x15a   :  { %v246_v18 = vpop.xlane.xlu1 %245 }
 0x15b   :  { %1327 = vmatpush3.msra.mxu0 %v246_v18  ;;  %v681_v18 = vsel %vm680_vm4, %v1728_v27, 0.0  ;;  %v674_v27 = vsel %vm673_vm2, %v1741_v34, 0.0 }
 0x15c   :  { %1328 = vmatprep.subr.mxu0 %v1511_v20 }
 0x15d   :  { %1072 = vrot.lane.b32.xlu1 %v1065_v19, %s1516_s28 }
 0x163   :  { %v437_v1 = vpop.f32.mrf.mxu1 }
 0x164   :  { %v441_v45 = vmul.f32 100.0, %v437_v1 }
 0x165   :  { %v1347_v26 = vpop.f32.mrf.mxu1 }
 0x166   :  { %v442_v38 = vsub.f32 100.0, %v441_v45 }
 0x170   :  { %236 = vadd.xlane.f32.xlu0 %v235_v49 }
 0x174   :  { %769 = vadd.xlane.f32.xlu0 %v768_v9 }
 0x181   :  { %233 = vadd.xlane.f32.xlu1 %v232_v58  ;;  %v578_v58 = vld [vmem:[%s2040_s9] sm:$0x7] }
 0x182   :  { %v1009_v8 = vpop.permute.xlu1 %1008 }
 0x183   :  { %v1015_v21 = vmul.f32 %v1009_v8, %v1766_v46 }
 0x185   :  { %765 = vadd.xlane.f32.xlu1 %v764_v13 }
 0x186   :  { %v991_v17 = vpop.permute.xlu0 %990 }
 0x187   :  { %v997_v31 = vmul.f32 %v991_v17, %v1784_v53 }
 0x189   :  { %v1045_v57 = vadd.f32 %v1015_v21, %v997_v31  ;;  %682 = vadd.xlane.f32.xlu1 %v681_v18 }
 0x18a   :  { %1070 = vrot.lane.b32.xlu0 %v1064_v29, %s1516_s28  ;;  %v989_v60 = vpop.permute.xlu1 %988 }
 0x18b   :  { %v996_v46 = vmul.f32 %v989_v60, %v1815_v12  ;;  %v856_v12 = vsel %vm760_vm1, %v1908_v4, 0.0 }
 0x18d   :  { %678 = vadd.xlane.f32.xlu1 %v677_v23 }
 0x18e   :  { %v1007_v25 = vpop.permute.xlu1 %1006 }
 0x18f   :  { %v1014_v53 = vmul.f32 %v1007_v25, %v1827_v15 }
 0x191   :  { %v1947_v28 = vadd.f32 %v1014_v53, %v996_v46  ;;  %675 = vadd.xlane.f32.xlu1 %v674_v27 }
 0x192   :  { %v1036_v32 = vpop.permute.xlu1 %1035 }
 0x193   :  { %v1042_v33 = vmul.f32 %v1036_v32, %v1027_v30  ;;  %v1517_v30 = vmov 0  }
 0x194   :  { %1428 = vset.pattern.permute.xlu0 %v1517_v30  ;;  %1427 = vset.pattern.permute.xlu1 %v1517_v30 }
 0x195   :  { %v1048_v35 = vsub.f32 %v1045_v57, %v1042_v33  ;;  %863 = vadd.xlane.f32.xlu1 %v862_v24 }
 0x197   :  { %1477 = vrcp.f32 %v1048_v35 }
 0x199   :  { %860 = vadd.xlane.f32.xlu1 %v859_v36 }
 0x19d   :  { %857 = vadd.xlane.f32.xlu1 %v856_v12 }
 0x1a4   :  { %v1478_v15 = vpop.eup %1477 }
 0x1a5   :  { %v1957_v37 = vmul.f32 %v1478_v15, %v1042_v33 }
 0x1a9   :  { %762 = vadd.xlane.f32.xlu0 %v761_v22 }
 0x1bc   :  { %v243_v40 = vpop.xlane.xlu0 %242 }
 0x1bd   :  { %1329 = vmatpush3.msra.mxu0 %v243_v40 }
 0x1be   :  { %1330 = vmatprep.subr.mxu0 %v1511_v20 }
 0x1bf   :  { %1183 = vperm.xlu0 %1428, %v442_v38  }
 0x1c0   :  { %v987_v59 = vpop.permute.xlu0 %986 }
 0x1c1   :  { %v995_v21 = vmul.f32 %v987_v59, %v1860_v39 }
 0x1c4   :  { %v1034_v4 = vpop.permute.xlu0 %1033 }
 0x1c5   :  { %v1041_v13 = vmul.f32 %v1034_v4, %v1026_v61 }
 0x1c7   :  { %v1047_v61 = vsub.f32 %v1947_v28, %v1041_v13 }
 0x1c8   :  { %v1075_v16 = vpop.permute.xlu0 %1074 }
 0x1c9   :  { %v1081_v41 = vmul.f32 %v1075_v16, %v1066_v43 }
 0x1cb   :  { %1479 = vrcp.f32 %v1081_v41  ;;  %v1084_v50 = vsub.f32 %v1081_v41, %v1048_v35 }
 0x1cd   :  { %v240_v47 = vpop.xlane.xlu1 %239 }
 0x1ce   :  { %1331 = vmatpush3.msra.mxu0 %v240_v47 }
 0x1cf   :  { %1332 = vmatprep.subr.mxu0 %v1511_v20 }
 0x1d1   :  { %v1005_v52 = vpop.permute.xlu1 %1004 }
 0x1d2   :  { %v1013_v17 = vmul.f32 %v1005_v52, %v1900_v54 }
 0x1d4   :  { %v1043_v54 = vadd.f32 %v1013_v17, %v995_v21 }
 0x1d5   :  { %v574_v34 = vpop.f32.mrf.mxu1  ;;  %v1032_v43 = vpop.permute.xlu1 %1031 }
 0x1d6   :  { %v580_v9 = vsub.f32 %v574_v34, %v579_v56  ;;  %v1040_v31 = vmul.f32 %v1032_v43, %v1025_v7 }
 0x1d7   :  { %v1362_v44 = vpop.f32.mrf.mxu1 }
 0x1d8   :  { %v1480_v10 = vpop.eup %1479  ;;  %v581_v63 = vand.u32 2147483647, %v580_v9  ;;  %v1046_v39 = vsub.f32 %v1043_v54, %v1040_v31 }
 0x1d9   :  { %v1965_v48 = vmul.f32 %v1480_v10, %v1084_v50  ;;  %v1073_v62 = vpop.permute.xlu1 %1072 }
 0x1da   :  { %v1080_v57 = vmul.f32 %v1073_v62, %v1065_v19 }
 0x1db   :  { %v1093_v49 = vsub.f32 %v1957_v37, %v1965_v48 }
 0x1dc   :  { %1481 = vrcp.f32 %v1080_v57 }
 0x1dd   :  { %1483 = vrcp.f32 %v1047_v61  ;;  %v1096_v24 = vsub.f32 1.0, %v1093_v49  ;;  %v1170_v49 = vld [vmem:[%s2043_s12] sm:$0xff]  ;;  %s1518_s12 = smov [#allocation2]  }
 0x1de   :  { %s1255_s24 = sshll.u32 %s1518_s12, 4  ;;  %s1256_s24 = int_to_ptr.vmem [resolvable:$true] %s1255_s24 }
 0x1df   :  { %s1489_s25 = scalar_lea.vmem %s1256_s24, 64  ;;  %p1494_p1 = scmp.lt.s32.totalorder %s1256_s24, %s1256_s24 }
 0x1e0   :  { %p1490_p0 = scmp.ne.s32.totalorder %s1256_s24, %s1489_s25  ;;  %p1495_p2 = scmp.lt.s32.totalorder %s1489_s25, %s1489_s25 }
 0x1e2   :  { %p1496_p3 = por %p1495_p2, %p1494_p1 }
 0x1e4   :  { %p1497_p4 = pnand %p1496_p3, %p1490_p0 }
 0x1e9   :  { %v1482_v19 = vpop.eup %1481 }
 0x1ea   :  { %v1484_v14 = vpop.eup %1483 }
 0x1eb   :  { %v1052_v53 = vmul.f32 %v1484_v14, %v1041_v13 }
 0x1f9   :  { %v237_v51 = vpop.xlane.xlu0 %236 }
 0x1fa   :  { %1333 = vmatpush3.msra.mxu0 %v237_v51 }
 0x1fb   :  { %1334 = vmatprep.subr.mxu0 %v1511_v20 }
 0x1fd   :  { %v770_v0 = vpop.xlane.xlu0 %769 }
 0x1fe   :  { %1378 = vmatpush3.msk.msra.mxu1 %vm367_vm10, %v770_v0 }
 0x1ff   :  { %1379 = vmatprep.subr.mxu1 %v1511_v20 }
 0x201   :  { %v1071_v18 = vpop.permute.xlu0 %1070 }
 0x202   :  { %v1079_v23 = vmul.f32 %v1071_v18, %v1064_v29  ;;  %v1083_v29 = vsub.f32 %v1080_v57, %v1047_v61 }
 0x204   :  { %1485 = vrcp.f32 %v1079_v23  ;;  %v1088_v27 = vmul.f32 %v1482_v19, %v1083_v29  ;;  %v1082_v1 = vsub.f32 %v1079_v23, %v1046_v39 }
 0x205   :  { %1487 = vrcp.f32 %v1046_v39 }
 0x206   :  { %v1092_v32 = vsub.f32 %v1052_v53, %v1088_v27 }
 0x208   :  { %v1095_v36 = vsub.f32 1.0, %v1092_v32 }
 0x20a   :  { %v234_v6 = vpop.xlane.xlu1 %233 }
 0x20b   :  { %1335 = vmatpush3.msra.mxu0 %v234_v6 }
 0x20c   :  { %1337 = vmatmul.mubr.msk.f32.vlgmr.msra.gmra.mxu0 %vm251_vm15, %v250_v3  ;;  %1363 = vmatprep.subr.mxu0 %v1511_v20 }
 0x20d   :  { %1364 = vmatpush3.msk.msra.mxu0 %vm586_vm5, %v581_v63  ;;  %1365 = vmatprep.mubr.msk.f32.mxu0 %vm1512_vm3, %v1511_v20 }
 0x20e   :  { %v766_v5 = vpop.xlane.xlu1 %765  ;;  %1368 = vmatprep.subr.mxu0 %v1511_v20 }
 0x20f   :  { %1380 = vmatpush3.msra.mxu1 %v766_v5 }
 0x210   :  { %1366 = vmatmul.mubr.msk.f32.vlgmr.msra.gmra.mxu0 %vm582_vm6, %v578_v58  ;;  %1381 = vmatprep.subr.mxu1 %v1511_v20 }
 0x211   :  { %1374 = vmatprep.mubr.msk.f32.mxu0 %vm1512_vm3, %v1511_v20  ;;  %v1486_v25 = vpop.eup %1485 }
 0x212   :  { %v683_v11 = vpop.xlane.xlu1 %682  ;;  %v1488_v46 = vpop.eup %1487  ;;  %v1086_v26 = vmul.f32 %v1486_v25, %v1082_v1 }
 0x213   :  { %1369 = vmatpush3.msk.msra.mxu0 %vm367_vm10, %v683_v11  ;;  %v1050_v28 = vmul.f32 %v1488_v46, %v1040_v31 }
 0x214   :  { %1370 = vmatprep.subr.mxu0 %v1511_v20 }
 0x215   :  { %v1091_v35 = vsub.f32 %v1050_v28, %v1086_v26 }
 0x216   :  { %v679_v8 = vpop.xlane.xlu1 %678 }
 0x217   :  { %1371 = vmatpush3.msra.mxu0 %v679_v8  ;;  %v1094_v12 = vsub.f32 1.0, %v1091_v35 }
 0x218   :  { %1372 = vmatprep.subr.mxu0 %v1511_v20 }
 0x21a   :  { %v676_v60 = vpop.xlane.xlu1 %675 }
 0x21b   :  { %1373 = vmatpush3.msra.mxu0 %v676_v60 }
 0x21c   :  { %1386 = vmatprep.subr.mxu0 %v1511_v20  ;;  %1375 = vmatmul.mubr.msk.f32.vlgmr.msra.gmra.mxu0 %vm363_vm13, %v672_v42 }
 0x21d   :  { %1392 = vmatprep.mubr.msk.f32.mxu0 %vm1512_vm3, %v1511_v20 }
 0x21e   :  { %v864_v2 = vpop.xlane.xlu1 %863 }
 0x21f   :  { %1387 = vmatpush3.msk.msra.mxu0 %vm367_vm10, %v864_v2 }
 0x220   :  { %1388 = vmatprep.subr.mxu0 %v1511_v20 }
 0x222   :  { %v861_v55 = vpop.xlane.xlu1 %860 }
 0x223   :  { %1389 = vmatpush3.msra.mxu0 %v861_v55 }
 0x224   :  { %1390 = vmatprep.subr.mxu0 %v1511_v20 }
 0x226   :  { %v858_v7 = vpop.xlane.xlu1 %857 }
 0x227   :  { %1391 = vmatpush3.msra.mxu0 %v858_v7 }
 0x228   :  { %1393 = vmatmul.mubr.msk.f32.vlgmr.msra.gmra.mxu0 %vm363_vm13, %v672_v42 }
 0x232   :  { %v763_v33 = vpop.xlane.xlu0 %762 }
 0x233   :  { %1382 = vmatpush3.msra.mxu1 %v763_v33 }
 0x234   :  { %1384 = vmatmul.mubr.msk.f32.vlgmr.msra.gmra.mxu1 %vm363_vm13, %v672_v42  ;;  %1395 = vmatprep.subr.mxu1 %v1511_v20 }
 0x235   :  { %1396 = vmatpush3.msk.msra.mxu1 %vm367_vm10, %v1096_v24  ;;  %1401 = vmatprep.mubr.msk.f32.mxu1 %vm1512_vm3, %v1511_v20  ;;  %vm1247_vm3 = vcmask 59392  }
 0x236   :  { %1397 = vmatprep.subr.mxu1 %v1511_v20 }
 0x237   :  { %1398 = vmatpush3.msra.mxu1 %v1095_v36 }
 0x238   :  { %1399 = vmatprep.subr.mxu1 %v1511_v20  ;;  %v1176_v20 = vlaneseq }
 0x239   :  { %1400 = vmatpush3.msra.mxu1 %v1094_v12 }
 0x23a   :  { %1402 = vmatmul.mubr.msk.f32.vlgmr.msra.gmra.mxu1 %vm363_vm13, %v672_v42  ;;  %v1177_v34 = vshrl.u32 %v1176_v20, 7  ;;  %v1184_v9 = vpop.permute.xlu0 %1183 }
 0x23c   :  { %v1178_v44 = vsub.s32 0, %v1177_v34  ;;  %v1188_v10 = vsub.s32 1, %v1177_v34  ;;  %v1199_v48 = vsub.s32 2, %v1177_v34  ;;  %v1210_v56 = vsub.s32 3, %v1177_v34 }
 0x23d   :  { %v1221_v3 = vsub.s32 4, %v1177_v34  ;;  %v1232_v11 = vsub.s32 5, %v1177_v34  ;;  %v1243_v57 = vsub.s32 6, %v1177_v34 }
 0x23e   :  { %v1179_v51 = vrot.slane %v1170_v49, %v1178_v44  ;;  %v1189_v0 = vrot.slane %v1170_v49, %v1188_v10  ;;  %v1200_v43 = vrot.slane %v1170_v49, %v1199_v48  ;;  %v1211_v5 = vrot.slane %v1170_v49, %v1210_v56 }
 0x23f   :  { %v1222_v8 = vrot.slane %v1170_v49, %v1221_v3  ;;  %v1233_v31 = vrot.slane %v1170_v49, %v1232_v11  ;;  %v1244_v39 = vrot.slane %v1170_v49, %v1243_v57 }
 0x240   :  { %v1190_v6 = vmul.f32 %v1189_v0, %v1184_v9 }
 0x2cc   :  { %v321_v15 = vpop.f32.mrf.mxu0 }
 0x2cd   :  { %1173 = vperm.xlu1 %1427, %v321_v15  }
 0x2ce   :  { %v1338_v37 = vpop.f32.mrf.mxu0 }
 0x2d0   :  { %v656_v22 = vpop.f32.mrf.mxu0 }
 0x2d2   :  { %v1367_v30 = vpop.f32.mrf.mxu0 }
 0x2dc   :  { %v756_v45 = vpop.f32.mrf.mxu0 }
 0x2de   :  { %v1376_v38 = vpop.f32.mrf.mxu0 }
 0x2e8   :  { %v934_v40 = vpop.f32.mrf.mxu0 }
 0x2ea   :  { %v1394_v59 = vpop.f32.mrf.mxu0 }
 0x2f4   :  { %v840_v4 = vpop.f32.mrf.mxu1 }
 0x2f6   :  { %v1385_v16 = vpop.f32.mrf.mxu1 }
 0x2fa   :  { %v1166_v41 = vpop.f32.mrf.mxu1 }
 0x2fb   :  { %1216 = vperm.xlu1 %1427, %v1166_v41  }
 0x2fc   :  { %v1403_v47 = vpop.f32.mrf.mxu1 }
 0x2ff   :  { %1194 = vperm.xlu1 %1427, %v656_v22  }
 0x303   :  { %1205 = vperm.xlu1 %1427, %v756_v45  }
 0x307   :  { %1227 = vperm.xlu1 %1427, %v840_v4  }
 0x30b   :  { %1238 = vperm.xlu1 %1427, %v934_v40  }
 0x348   :  { %v1174_v50 = vpop.permute.xlu1 %1173 }
 0x349   :  { %v1180_v62 = vmul.f32 %v1179_v51, %v1174_v50 }
 0x34b   :  { %v1191_v13 = vadd.f32 %v1190_v6, %v1180_v62 }
 0x376   :  { %v1217_v52 = vpop.permute.xlu1 %1216 }
 0x377   :  { %v1223_v42 = vmul.f32 %v1222_v8, %v1217_v52 }
 0x37a   :  { %v1195_v63 = vpop.permute.xlu1 %1194 }
 0x37b   :  { %v1201_v58 = vmul.f32 %v1200_v43, %v1195_v63 }
 0x37d   :  { %v1202_v18 = vadd.f32 %v1201_v58, %v1191_v13 }
 0x37e   :  { %v1206_v17 = vpop.permute.xlu1 %1205 }
 0x37f   :  { %v1212_v21 = vmul.f32 %v1211_v5, %v1206_v17 }
 0x381   :  { %v1213_v61 = vadd.f32 %v1212_v21, %v1202_v18 }
 0x382   :  { %v1228_v60 = vpop.permute.xlu1 %1227 }
 0x383   :  { %v1224_v54 = vadd.f32 %v1223_v42, %v1213_v61  ;;  %v1234_v23 = vmul.f32 %v1233_v31, %v1228_v60 }
 0x385   :  { %v1235_v55 = vadd.f32 %v1234_v23, %v1224_v54 }
 0x386   :  { %v1239_v2 = vpop.permute.xlu1 %1238 }
 0x387   :  { %v1245_v7 = vmul.f32 %v1244_v39, %v1239_v2 }
 0x389   :  { %v1246_v19 = vadd.f32 %v1245_v7, %v1235_v55 }
 0x38b   :  { %1248 = vst.msk [vmem:[#allocation2] sm:$0x7] %vm1247_vm3, %v1246_v19 }
 0x38c   :  { %1500 = shalt.err (!%p1497_p4)
}
 0x38d   :  { %1258 = dma.vmem_to_hbm [thread:$0]  %s1256_s24, 64, %s2044_s13, [#allocation3]  }
 0x38e   :  { %1509 = dma.done.wait [#allocation3], 64  }
 0x38f   :  { %1510 = vsyncadd [#allocation3], 4294967232 }
 0x390   :  { %1262 = vsyncpa [#allocation3], 1 }

</bundles_post_ra>
